<compile_context>
chip_gen: v7x
topology: tpu7x:2x2x1
jax: 0.10.0
libtpu: 0.0.40
codegen_flags: <defaults>
</compile_context>

<pallas_src>
import jax
import jax.numpy as jnp
from jax.experimental import pallas as pl
from jax.experimental.pallas import tpu as pltpu


LN_EPS = 1e-5  # torch.nn.LayerNorm default


def _round_up(x, m):
    return ((x + m - 1) // m) * m


def _vmem_capacity_bytes():
    """Per-chip VMEM capacity; falls back to the smallest current chip (v7x)."""
    try:
        return int(pltpu.get_tpu_info().vmem_capacity_bytes)
    except Exception:
        return 64 << 20


# ------------------------------------------------------------------ kernels --

def ln_kernel(x_ref, gamma_ref, beta_ref, y_ref):
    """LayerNorm over the last dim; stats in f32, output in the matmul dtype."""
    x = x_ref[...]
    mean = jnp.mean(x, axis=-1, keepdims=True)
    centered = x - mean
    var = jnp.mean(centered * centered, axis=-1, keepdims=True)
    xn = centered * jax.lax.rsqrt(var + LN_EPS)
    y_ref[...] = (xn * gamma_ref[...] + beta_ref[...]).astype(y_ref.dtype)


def matmul_bias_kernel(y_ref, w_ref, b_ref, out_ref):
    """(tm, H) @ (H, tv) on the MXU with f32 accumulation, plus f32 bias."""
    acc = jnp.dot(y_ref[...], w_ref[...], preferred_element_type=jnp.float32)
    out_ref[...] = (acc + b_ref[...]).astype(out_ref.dtype)


# --------------------------------------------------------------- weight prep --

def prepare_head(w_t, bias, *, tv=512, matmul_dtype=jnp.bfloat16):
    """One-time weight preparation (hoisted out of the per-call forward).

    w_t  : (H, V) f32   transpose of the torch nn.Linear weight
    bias : (V,)   f32
    Returns (w_padded (H, v_pad) matmul_dtype, bias_padded (1, v_pad) f32, tv_eff).
    Vocab is padded to a multiple of tv_eff (itself a multiple of 128) so every
    logits store is lane-dense.  Sweep tv=1024 on v6e (128 MiB VMEM).
    """
    H, V = w_t.shape
    tv_eff = min(tv, _round_up(V, 128))
    v_pad = _round_up(V, tv_eff)
    w = w_t.astype(matmul_dtype)
    b = bias.astype(jnp.float32)
    if v_pad != V:
        w = jnp.pad(w, ((0, 0), (0, v_pad - V)))
        b = jnp.pad(b, ((0, v_pad - V),))
    return w, b.reshape(1, v_pad), tv_eff


# ------------------------------------------------------------------ forward --

def plain_gpt_forward(token_ids, emb_table, gamma, beta, w_padded, bias_padded,
                      *, vocab_size, tv_eff, tm=512, out_dtype=jnp.float32):
    """Full PlainGpt forward.

    token_ids  : (B, S) int32
    emb_table  : (V, H) f32
    gamma/beta : (H,)   f32
    w_padded   : (H, v_pad) bf16  (from prepare_head)
    bias_padded: (1, v_pad) f32   (from prepare_head)
    returns    : (B, S, V) out_dtype logits
    """
    B, S = token_ids.shape
    _, H = emb_table.shape
    V = vocab_size
    v_pad = w_padded.shape[1]
    assert w_padded.shape[0] == H and v_pad % tv_eff == 0
    matmul_dtype = w_padded.dtype

    N = B * S
    y_bytes = jnp.dtype(matmul_dtype).itemsize
    w_bytes = y_bytes
    out_bytes = jnp.dtype(out_dtype).itemsize

    capacity = _vmem_capacity_bytes()
    budget = int(0.6 * capacity)       # tile-selection budget (leaves headroom)
    cap_limit = int(0.75 * capacity)   # ceiling for vmem_limit_bytes

    def mm_need(tm_):
        # Double-buffered y / weight / output tiles + resident bias + slack.
        return (2 * tm_ * H * y_bytes
                + 2 * H * tv_eff * w_bytes
                + 2 * tm_ * tv_eff * out_bytes
                + 2 * tv_eff * 4
                + (1 << 20))

    # ---- row-tile selection --------------------------------------------------
    n8 = _round_up(N, 8)
    if mm_need(n8) <= budget:
        # Whole bf16 activation slab resident -> the weight streams exactly once.
        tm_eff = n8
    else:
        cands = [c for c in (1024, 512, 256, 128, 64, 32, 16, 8) if c <= min(tm, n8)]
        if not cands:
            cands = [8]
        fitting = [c for c in cands if mm_need(c) <= budget] or [8]
        # Minimize row-padding waste; prefer the larger tile on ties.
        tm_eff = min(fitting, key=lambda c: (_round_up(N, c) - N, -c))
    n_pad = _round_up(N, tm_eff)
    # TODO(synk): for very large H, split the (H, tv) weight tile with a
    # K-reduction grid axis + f32 VMEM accumulator (pl.when init/finalize).

    def ln_need(t):
        return 2 * t * H * 4 + 2 * t * H * y_bytes + 4 * H * 4 + (1 << 20)

    tm_ln = 8
    d = 8
    while d <= min(n_pad, 1024):
        if n_pad % d == 0 and ln_need(d) <= budget:
            tm_ln = d
        d += 8

    # ---- embedding gather (JAX glue; pad the ids, not the (N, H) slab) --------
    # Pad rows reuse token id 0 (a real embedding row), so LayerNorm on them is
    # well-conditioned; they are sliced off at the end.
    # TODO(synk): fuse the gather into the LN pass (scalar-prefetched ids +
    # manual DMA gather) to remove the (N, H) HBM round-trip for large H.
    flat_ids = token_ids.reshape(N)
    if n_pad != N:
        flat_ids = jnp.pad(flat_ids, (0, n_pad - N))
    emb = jnp.take(emb_table, flat_ids, axis=0).astype(jnp.float32)  # (n_pad, H)

    gamma2 = gamma.reshape(1, H).astype(jnp.float32)
    beta2 = beta.reshape(1, H).astype(jnp.float32)

    # ---- pass 1: LayerNorm -> bf16 activation slab ----------------------------
    ln_cost = pl.CostEstimate(
        flops=8 * n_pad * H,
        transcendentals=n_pad,
        bytes_accessed=n_pad * H * 4 + n_pad * H * y_bytes + 2 * H * 4,
    )
    y = pl.pallas_call(
        ln_kernel,
        out_shape=jax.ShapeDtypeStruct((n_pad, H), matmul_dtype),
        grid_spec=pltpu.PrefetchScalarGridSpec(
            num_scalar_prefetch=0,
            grid=(n_pad // tm_ln,),
            in_specs=[
                pl.BlockSpec((tm_ln, H), lambda i: (i, 0)),
                pl.BlockSpec((1, H), lambda i: (0, 0)),
                pl.BlockSpec((1, H), lambda i: (0, 0)),
            ],
            out_specs=pl.BlockSpec((tm_ln, H), lambda i: (i, 0)),
        ),
        compiler_params=pltpu.CompilerParams(
            dimension_semantics=("parallel",),
            vmem_limit_bytes=min(max(ln_need(tm_ln) + (2 << 20), 8 << 20), cap_limit),
        ),
        cost_estimate=ln_cost,
    )(emb, gamma2, beta2)

    # ---- pass 2: hidden -> vocab matmul + bias --------------------------------
    grid = (n_pad // tm_eff, v_pad // tv_eff)  # vocab inner: y tile reused across j
    mm_cost = pl.CostEstimate(
        flops=2 * n_pad * H * v_pad,
        transcendentals=0,
        bytes_accessed=(grid[0] * H * v_pad * w_bytes   # weight re-streaming
                        + n_pad * H * y_bytes
                        + n_pad * v_pad * out_bytes
                        + v_pad * 4),
    )
    # TODO(synk): sweep pipeline_mode=pl.Buffered(3) on the weight spec when
    # per-step compute does not cover the weight DMA burst (small H).
    logits = pl.pallas_call(
        matmul_bias_kernel,
        out_shape=jax.ShapeDtypeStruct((n_pad, v_pad), out_dtype),
        grid_spec=pltpu.PrefetchScalarGridSpec(
            num_scalar_prefetch=0,
            grid=grid,
            in_specs=[
                pl.BlockSpec((tm_eff, H), lambda i, j: (i, 0)),   # y tile (const over j)
                pl.BlockSpec((H, tv_eff), lambda i, j: (0, j)),   # weight column tile
                pl.BlockSpec((1, tv_eff), lambda i, j: (0, j)),   # bias column tile
            ],
            out_specs=pl.BlockSpec((tm_eff, tv_eff), lambda i, j: (i, j)),
        ),
        compiler_params=pltpu.CompilerParams(
            dimension_semantics=("parallel", "parallel"),  # keep 2-TC vocab sharding
            vmem_limit_bytes=min(max(mm_need(tm_eff) + (2 << 20), 8 << 20), cap_limit),
        ),
        cost_estimate=mm_cost,
    )(y, w_padded, bias_padded)

    return logits[:N, :V].reshape(B, S, V)


# ---------------------------------------------------------------- reference --

def plain_gpt_reference(token_ids, emb_table, gamma, beta, w_t, bias,
                        matmul_dtype=jnp.float32):
    """Pure-JAX reference matching torch semantics (optionally mirroring the
    kernel's matmul-dtype cast)."""
    emb = jnp.take(emb_table, token_ids, axis=0)              # (B, S, H)
    mean = jnp.mean(emb, axis=-1, keepdims=True)
    var = jnp.mean((emb - mean) ** 2, axis=-1, keepdims=True)
    xn = (emb - mean) * jax.lax.rsqrt(var + LN_EPS)
    y = xn * gamma + beta
    logits = jnp.einsum(
        "bsh,hv->bsv",
        y.astype(matmul_dtype),
        w_t.astype(matmul_dtype),
        preferred_element_type=jnp.float32,
    )
    return logits + bias


if __name__ == "__main__":
    # Small shapes consistent with the module: batch=2, seq=8, hidden=32, vocab=64
    B, S, H, V = 2, 8, 32, 64

    key = jax.random.PRNGKey(0)
    k_ids, k_emb, k_g, k_b, k_w, k_bias = jax.random.split(key, 6)

    token_ids = jax.random.randint(k_ids, (B, S), 0, V, dtype=jnp.int32)

    # Deterministic parameter init (synthetic, matching the torch shapes):
    #   nn.Embedding(V, H).weight          -> (V, H)
    #   nn.LayerNorm(H).weight / .bias     -> (H,), (H,)
    #   nn.Linear(H, V).weight / .bias     -> (V, H), (V,)  -> store W^T as (H, V)
    emb_table = jax.random.normal(k_emb, (V, H), dtype=jnp.float32)
    gamma = 1.0 + 0.1 * jax.random.normal(k_g, (H,), dtype=jnp.float32)
    beta = 0.1 * jax.random.normal(k_b, (H,), dtype=jnp.float32)
    w_torch = jax.random.normal(k_w, (V, H), dtype=jnp.float32) * (1.0 / jnp.sqrt(H))
    w_t = w_torch.T  # (H, V)
    bias = 0.1 * jax.random.normal(k_bias, (V,), dtype=jnp.float32)

    # One-time weight prep (hoisted out of the per-call forward).
    w_pad, bias_pad, tv_eff = prepare_head(w_t, bias)

    out = plain_gpt_forward(
        token_ids, emb_table, gamma, beta, w_pad, bias_pad,
        vocab_size=V, tv_eff=tv_eff,
    )
    out = jax.block_until_ready(out)

    assert out.shape == (B, S, V), out.shape

    # Tight check against a reference that mirrors the kernel's bf16 matmul cast.
    ref_bf16 = plain_gpt_reference(
        token_ids, emb_table, gamma, beta, w_t, bias, matmul_dtype=jnp.bfloat16
    )
    ref_bf16 = jax.block_until_ready(ref_bf16)
    assert jnp.allclose(out, ref_bf16, atol=1e-3, rtol=1e-3), "mismatch vs bf16 ref"

    # Loose check against the full-f32 torch-semantics reference (bf16 matmul error).
    ref_f32 = plain_gpt_reference(token_ids, emb_table, gamma, beta, w_t, bias)
    ref_f32 = jax.block_until_ready(ref_f32)
    assert jnp.allclose(out, ref_f32, atol=3e-2, rtol=3e-2), "mismatch vs f32 ref"

    print("KERNEL_OK")
</pallas_src>

<mosaic_0001>
module attributes {stable_mosaic.version = 11 : i64} {
  func.func @ln_kernel(%arg0: i32, %arg1: memref<16x32xf32, #tpu.memory_space<vmem>>, %arg2: memref<1x32xf32, #tpu.memory_space<vmem>>, %arg3: memref<1x32xf32, #tpu.memory_space<vmem>>, %arg4: memref<16x32xbf16, #tpu.memory_space<vmem>>) attributes {dimension_semantics = [#tpu.dimension_semantics<parallel>], iteration_bounds = array<i64: 1>, scalar_prefetch = 0 : i64, scratch_operands = 0 : i64, tpu.core_type = #tpu.core_type<tc>, window_params = [{transform_indices = @transform_0, window_bounds = array<i64: 16, 32>}, {pipeline_mode = #tpu.pipeline_mode<synchronous>, transform_indices = @transform_1, window_bounds = array<i64: 1, 32>}, {pipeline_mode = #tpu.pipeline_mode<synchronous>, transform_indices = @transform_2, window_bounds = array<i64: 1, 32>}, {transform_indices = @transform_3, window_bounds = array<i64: 16, 32>}]} {
    %c0 = arith.constant 0 : index
    %c0_0 = arith.constant 0 : index
    %0 = vector.load %arg1[%c0, %c0_0] : memref<16x32xf32, #tpu.memory_space<vmem>>, vector<16x32xf32>
    %cst = arith.constant dense<0.000000e+00> : vector<16xf32>
    %1 = vector.multi_reduction <add>, %0, %cst [1] : vector<16x32xf32> to vector<16xf32>
    %2 = vector.shape_cast %1 : vector<16xf32> to vector<16x1xf32>
    %cst_1 = arith.constant 3.200000e+01 : f32
    %3 = vector.broadcast %cst_1 : f32 to vector<16x1xf32>
    %4 = arith.divf %2, %3 : vector<16x1xf32>
    %5 = vector.broadcast %4 : vector<16x1xf32> to vector<16x32xf32>
    %6 = arith.subf %0, %5 : vector<16x32xf32>
    %7 = arith.mulf %6, %6 : vector<16x32xf32>
    %cst_2 = arith.constant dense<0.000000e+00> : vector<16xf32>
    %8 = vector.multi_reduction <add>, %7, %cst_2 [1] : vector<16x32xf32> to vector<16xf32>
    %9 = vector.shape_cast %8 : vector<16xf32> to vector<16x1xf32>
    %cst_3 = arith.constant 3.200000e+01 : f32
    %10 = vector.broadcast %cst_3 : f32 to vector<16x1xf32>
    %11 = arith.divf %9, %10 : vector<16x1xf32>
    %cst_4 = arith.constant 9.99999974E-6 : f32
    %12 = vector.broadcast %cst_4 : f32 to vector<16x1xf32>
    %13 = arith.addf %11, %12 : vector<16x1xf32>
    %14 = math.rsqrt %13 : vector<16x1xf32>
    %15 = vector.broadcast %14 : vector<16x1xf32> to vector<16x32xf32>
    %16 = arith.mulf %6, %15 : vector<16x32xf32>
    %c0_5 = arith.constant 0 : index
    %c0_6 = arith.constant 0 : index
    %17 = vector.load %arg2[%c0_5, %c0_6] : memref<1x32xf32, #tpu.memory_space<vmem>>, vector<1x32xf32>
    %18 = vector.broadcast %17 : vector<1x32xf32> to vector<16x32xf32>
    %19 = arith.mulf %16, %18 : vector<16x32xf32>
    %c0_7 = arith.constant 0 : index
    %c0_8 = arith.constant 0 : index
    %20 = vector.load %arg3[%c0_7, %c0_8] : memref<1x32xf32, #tpu.memory_space<vmem>>, vector<1x32xf32>
    %21 = vector.broadcast %20 : vector<1x32xf32> to vector<16x32xf32>
    %22 = arith.addf %19, %21 : vector<16x32xf32>
    %23 = arith.truncf %22 : vector<16x32xf32> to vector<16x32xbf16>
    %c0_9 = arith.constant 0 : index
    %c0_10 = arith.constant 0 : index
    %24 = vector.load %arg4[%c0_9, %c0_10] : memref<16x32xbf16, #tpu.memory_space<vmem>>, vector<16x32xbf16>
    tpu.vector_store %arg4[%c0_9, %c0_10], %23 {strides = array<i32>} : memref<16x32xbf16, #tpu.memory_space<vmem>>, vector<16x32xbf16>,
    return
  }
  func.func @transform_0(%arg0: i32) -> (i32, i32) {
    %c0_i32 = arith.constant 0 : i32
    %c0_i32_0 = arith.constant 0 : i32
    return %arg0, %c0_i32 : i32, i32
  }
  func.func @transform_1(%arg0: i32) -> (i32, i32) {
    %c0_i32 = arith.constant 0 : i32
    %c0_i32_0 = arith.constant 0 : i32
    %c0_i32_1 = arith.constant 0 : i32
    return %c0_i32, %c0_i32_0 : i32, i32
  }
  func.func @transform_2(%arg0: i32) -> (i32, i32) {
    %c0_i32 = arith.constant 0 : i32
    %c0_i32_0 = arith.constant 0 : i32
    %c0_i32_1 = arith.constant 0 : i32
    return %c0_i32, %c0_i32_0 : i32, i32
  }
  func.func @transform_3(%arg0: i32) -> (i32, i32) {
    %c0_i32 = arith.constant 0 : i32
    %c0_i32_0 = arith.constant 0 : i32
    return %arg0, %c0_i32 : i32, i32
  }
}

</mosaic_0001>

<bundles_post_ra>
// kernel: tpu_custom_call.1
= control target key start
LH: loop header
LB: loop body
LE: loop exit
PB: predicated region body
PF: predicated region fallthrough
CT: control target
= control target key end

     0   :  { %8 = vsyncpa [#allocation3], 0  ;;  %s229_s0 = inlined_call_operand.hbm [shape: f32[16,32], index: 0, kind: input, shape index: {}]   ;;  %s230_s1 = inlined_call_operand.vmem [shape: f32[1,32], index: 1, kind: input, shape index: {}]   ;;  %s231_s2 = inlined_call_operand.vmem [shape: f32[1,32], index: 2, kind: input, shape index: {}]   ;;  %s232_s3 = inlined_call_operand.hbm [shape: bf16[16,32], index: 3, kind: output, shape index: {}]  }
   0x1   :  { %9 = vsyncpa [#allocation4], 0  ;;  %s169_s12 = smov [#allocation2]   ;;  %s121_s16 = scalar_lea.hbm %s229_s0, 256 }
   0x2   :  { %s15_s13 = sshll.u32 %s169_s12, 4  ;;  %p122_p0 = scmp.ne.s32.totalorder %s229_s0, %s121_s16  ;;  %s16_s13 = int_to_ptr.vmem [resolvable:$true] %s15_s13 }
   0x3   :  { %p125_p1 = scmp.lt.u32.totalorder %s121_s16, %s229_s0 }
   0x5   :  { %p127_p2 = pnand %p125_p1, %p122_p0 }
   0x7   :  { %130 = shalt.err (!%p127_p2)
}
   0x8   :  { %s131_s21 = scalar_lea.vmem %s16_s13, 256  ;;  %p136_p4 = scmp.lt.s32.totalorder %s16_s13, %s16_s13 }
   0x9   :  { %p132_p3 = scmp.ne.s32.totalorder %s16_s13, %s131_s21  ;;  %p137_p5 = scmp.lt.s32.totalorder %s131_s21, %s131_s21 }
   0xb   :  { %p138_p6 = por %p137_p5, %p136_p4 }
   0xd   :  { %p139_p7 = pnand %p138_p6, %p132_p3 }
   0xf   :  { %142 = shalt.err (!%p139_p7)
}
  0x10   :  { %s170_s22 = smov 128   ;;  %s171_s23 = smov 8  }
  0x11   :  { %21 = dma.hbm_to_vmem [thread:$0]  %s229_s0, 256, %s16_s13, [#allocation3], %s170_s22, %s170_s22, %s171_s23  }
  0x12   :  { %165 = dma.done.wait [#allocation3], 256  }
  0x13   :  { %166 = vsyncadd [#allocation3], 4294967040  ;;  %vm31_vm0 = vcmask 261120   ;;  %v29_v0 = vld [vmem:[#allocation2] sm:$0xff]  ;;  %v30_v1 = vld [vmem:[#allocation2 + $0x8] sm:$0xff]  ;;  %vm85_vm1 = vcmask 257024  }
  0x14   :  { %v32_v2 = vsel %vm31_vm0, %v29_v0, 0.0  ;;  %v35_v3 = vsel %vm31_vm0, %v30_v1, 0.0  ;;  %v105_v21 = vld [vmem:[%s230_s1] ss:$0 sm:$0xff]  ;;  %s172_s29 = smov [#allocation5]  }
  0x15   :  { %33 = vadd.xlane.f32.xlu0 %v32_v2  ;;  %v106_v23 = vld [vmem:[%s231_s2] ss:$0 sm:$0xff]  ;;  %s93_s30 = sshll.u32 %s172_s29, 4  ;;  %s94_s30 = int_to_ptr.vmem [resolvable:$true] %s93_s30 }
  0x16   :  { %s143_s1 = scalar_lea.vmem %s94_s30, 128  ;;  %p148_p9 = scmp.lt.s32.totalorder %s94_s30, %s94_s30 }
  0x17   :  { %p144_p8 = scmp.ne.s32.totalorder %s94_s30, %s143_s1  ;;  %p149_p10 = scmp.lt.s32.totalorder %s143_s1, %s143_s1 }
  0x19   :  { %36 = vadd.xlane.f32.xlu0 %v35_v3  ;;  %p150_p11 = por %p149_p10, %p148_p9 }
  0x1b   :  { %p151_p12 = pnand %p150_p11, %p144_p8 }
  0xa2   :  { %v34_v4 = vpop.xlane.xlu0 %33 }
  0xa3   :  { %v39_v5 = vmul.f32 0.03125, %v34_v4 }
  0xa5   :  { %v41_v6 = vsub.f32 %v29_v0, %v39_v5 }
  0xa6   :  { %v37_v7 = vpop.xlane.xlu0 %36 }
  0xa7   :  { %v40_v8 = vmul.f32 0.03125, %v37_v7  ;;  %v43_v9 = vmul.f32 %v41_v6, %v41_v6 }
  0xa9   :  { %v42_v10 = vsub.f32 %v30_v1, %v40_v8  ;;  %v45_v11 = vsel %vm31_vm0, %v43_v9, 0.0 }
  0xaa   :  { %46 = vadd.xlane.f32.xlu1 %v45_v11 }
  0xab   :  { %v44_v12 = vmul.f32 %v42_v10, %v42_v10 }
  0xad   :  { %v48_v13 = vsel %vm31_vm0, %v44_v12, 0.0 }
  0xae   :  { %49 = vadd.xlane.f32.xlu1 %v48_v13 }
 0x137   :  { %v47_v14 = vpop.xlane.xlu1 %46 }
 0x138   :  { %v51_v15 = vmul.f32 0.03125, %v47_v14 }
 0x13a   :  { %v53_v16 = vadd.f32 1e-05, %v51_v15 }
 0x13b   :  { %v50_v17 = vpop.xlane.xlu1 %49 }
 0x13c   :  { %117 = vrsqrt.f32 %v53_v16  ;;  %v52_v18 = vmul.f32 0.03125, %v50_v17 }
 0x13e   :  { %v54_v19 = vadd.f32 1e-05, %v52_v18 }
 0x140   :  { %119 = vrsqrt.f32 %v54_v19 }
 0x146   :  { %v118_v20 = vpop.eup %117 }
 0x147   :  { %v57_v22 = vmul.f32 %v118_v20, %v41_v6 }
 0x149   :  { %v66_v24 = vmul.f32 %v105_v21, %v57_v22 }
 0x14a   :  { %v120_v25 = vpop.eup %119 }
 0x14b   :  { %v58_v26 = vmul.f32 %v120_v25, %v42_v10  ;;  %v75_v27 = vadd.f32 %v106_v23, %v66_v24 }
 0x14d   :  { %v67_v28 = vmul.f32 %v105_v21, %v58_v26  ;;  %v109_v29 = vpack.c.bf16 %v75_v27, %v75_v27 }
 0x14f   :  { %v76_v30 = vadd.f32 %v106_v23, %v67_v28  ;;  %86 = vst.msk [vmem:[#allocation5] sm:$0xf] %vm85_vm1, %v109_v29 }
 0x151   :  { %v110_v31 = vpack.c.bf16 %v76_v30, %v76_v30 }
 0x153   :  { %87 = vst.msk [vmem:[#allocation5 + $0x4] sm:$0xf] %vm85_vm1, %v110_v31 }
 0x154   :  { %154 = shalt.err (!%p151_p12)
}
 0x155   :  { %s155_s5 = scalar_lea.hbm %s232_s3, 128 }
 0x156   :  { %p156_p13 = scmp.ne.s32.totalorder %s232_s3, %s155_s5  ;;  %p159_p0 = scmp.lt.u32.totalorder %s155_s5, %s232_s3 }
 0x158   :  { %p161_p1 = pnand %p159_p0, %p156_p13 }
 0x15a   :  { %164 = shalt.err (!%p161_p1)
}
 0x15b   :  { %s173_s10 = smov 64   ;;  %s174_s11 = smov 4  }
 0x15c   :  { %99 = dma.vmem_to_hbm [thread:$0]  %s94_s30, 128, %s232_s3, [#allocation4], %s173_s10, %s173_s10, %s174_s11  }
 0x15d   :  { %167 = dma.done.wait [#allocation4], 128  }
 0x15e   :  { %168 = vsyncadd [#allocation4], 4294967168 }
 0x15f   :  { %103 = vsyncpa [#allocation3], 1 }
 0x160   :  { %104 = vsyncpa [#allocation4], 1 }

</bundles_post_ra>
